<compile_context>
chip_gen: v7x
topology: tpu7x:2x2x1
jax: 0.10.0
libtpu: 0.0.40
codegen_flags: <defaults>
</compile_context>

<pallas_src>
import jax
import jax.numpy as jnp
from jax.experimental import pallas as pl
from jax.experimental.pallas import tpu as pltpu

LANE = 128   # vreg lane width
SUBLANE = 8  # vreg sublane count (f32)


def _round_up(x: int, m: int) -> int:
    return (x + m - 1) // m * m


def _pad2d(a, rows: int, cols: int):
    """Zero-pad a 2-D array up to (rows, cols); no-op if already that shape."""
    if a.shape == (rows, cols):
        return a
    return jnp.zeros((rows, cols), a.dtype).at[: a.shape[0], : a.shape[1]].set(a)


def _sigmoid(x):
    # Stable sigmoid: tanh is an EUP transcendental (free slot vs VALU) and
    # saturates cleanly for large |x| (no exp overflow -> no inf/NaN).
    return 0.5 * (jnp.tanh(0.5 * x) + 1.0)


def _vmem_cap_bytes() -> int:
    """Physical per-core VMEM; conservative fallback if the query fails."""
    try:
        return int(pltpu.get_tpu_info().vmem_capacity_bytes)
    except Exception:
        return 64 << 20  # v7x per-TC VMEM (smallest of v5e/v6e/v7x)


def _choose_tm(b_p8: int) -> int:
    """Largest power-of-two batch tile whose round-up waste is <= ~12.5%.

    Avoids e.g. B=576 -> B_p=1024 with TM=512 (78% wasted rows) while still
    keeping tiles large enough to amortize per-grid-step overhead.  TM=8
    always qualifies (b_p8 is already a multiple of 8)."""
    tol = max(b_p8 // 8, 0)
    for tm in (512, 256, 128, 64, 32, 16, 8):
        if _round_up(b_p8, tm) - b_p8 <= tol:
            return tm
    return 8


def mlp_kernel(x_ref, w1_ref, b1_ref, w2_ref, b2_ref, out_ref):
    # Hidden layer: MXU matmul (f32 accumulate) + bias + sigmoid.
    h = jnp.dot(x_ref[...], w1_ref[...], preferred_element_type=jnp.float32)
    h = _sigmoid(h + b1_ref[...])               # (1, Hp) broadcasts over batch tile
    # Output layer: MXU matmul + bias + sigmoid.  astype is a no-op in the
    # f32 path and re-quantizes h for the MXU in the bf16 path.
    o = jnp.dot(h.astype(w2_ref.dtype), w2_ref[...],
                preferred_element_type=jnp.float32)
    o = _sigmoid(o + b2_ref[...])
    out_ref[...] = o.astype(out_ref.dtype)


def prepare_mlp_params(w1, b1, w2, b2, *, compute_dtype=jnp.float32):
    """Pad weights/biases to lane-dense shapes ONCE (call at init, not per forward).

    w1: (D_in, H), b1: (1, H), w2: (H, D_out), b2: (1, D_out)   — weights are
    stored pre-transposed as (in_features, out_features) vs nn.Linear so the
    kernel does plain x @ W matmuls on the MXU.
    """
    D_in, H = w1.shape
    H2, D_out = w2.shape
    assert H2 == H
    D_in_p = _round_up(D_in, LANE)
    H_p = _round_up(H, LANE)
    D_out_p = _round_up(D_out, LANE)
    return {
        "w1p": _pad2d(w1.astype(compute_dtype), D_in_p, H_p),
        "b1p": _pad2d(b1.astype(jnp.float32).reshape(1, -1), 1, H_p),
        "w2p": _pad2d(w2.astype(compute_dtype), H_p, D_out_p),
        "b2p": _pad2d(b2.astype(jnp.float32).reshape(1, -1), 1, D_out_p),
        "in_dim": D_in,
        "out_dim": D_out,
    }


def _build_mlp_call(TM, D_in_p, H_p, D_out_p, B_p, grid_steps, vmem_limit,
                    optimized: bool):
    if optimized:
        # Constant-index weights/biases: one resident copy (no double buffer).
        w_kw = {"pipeline_mode": pl.Buffered(1)}
        # Tiny per-tile compute on long grids can expose x DMA -> 3-deep.
        x_kw = ({"pipeline_mode": pl.Buffered(3)}
                if (grid_steps >= 8 and D_in_p <= 256) else {})
    else:
        w_kw, x_kw = {}, {}

    in_specs = [
        # x: tiled over batch -> pipelined DMA overlapped with compute.
        pl.BlockSpec((TM, D_in_p), lambda i: (i, 0), **x_kw),
        # Weights / biases: constant block index -> resident in VMEM.
        pl.BlockSpec((D_in_p, H_p), lambda i: (0, 0), **w_kw),
        pl.BlockSpec((1, H_p), lambda i: (0, 0), **w_kw),
        pl.BlockSpec((H_p, D_out_p), lambda i: (0, 0), **w_kw),
        pl.BlockSpec((1, D_out_p), lambda i: (0, 0), **w_kw),
    ]
    return pl.pallas_call(
        mlp_kernel,
        out_shape=jax.ShapeDtypeStruct((B_p, D_out_p), jnp.float32),
        grid=(grid_steps,),
        in_specs=in_specs,
        out_specs=pl.BlockSpec((TM, D_out_p), lambda i: (i, 0)),
        compiler_params=pltpu.CompilerParams(
            # Weight-stationary kernel: only shard across TCs when there are
            # >= 2 independent batch tiles (otherwise it just doubles weight
            # HBM reads on v7x).
            dimension_semantics=(("parallel",) if grid_steps >= 2
                                 else ("arbitrary",)),
            vmem_limit_bytes=vmem_limit,
        ),
    )


def mlp_forward(x, params):
    """x: (B, D_in) f32; params from prepare_mlp_params()."""
    w1p, b1p, w2p, b2p = params["w1p"], params["b1p"], params["w2p"], params["b2p"]
    D_out = params["out_dim"]
    cdt = w1p.dtype

    B, D_in = x.shape
    D_in_p, H_p = w1p.shape
    D_out_p = w2p.shape[1]
    assert D_in <= D_in_p

    # Batch tiling (only x is padded per call; weights were padded at init).
    # Padding is mathematically inert: padded x columns are zero, padded
    # w1/w2 rows/cols and bias entries are zero, the padded hidden
    # activations (=0.5) hit zero rows of w2, and padded batch rows / output
    # columns are sliced off below.
    B_p8 = _round_up(B, SUBLANE)
    TM = _choose_tm(B_p8)
    B_p = _round_up(B_p8, TM)
    grid_steps = B_p // TM

    xp = _pad2d(x.astype(cdt), B_p, D_in_p)

    # Size the scoped-VMEM limit from the worst-case footprint (fallback path
    # double-buffers weights), capped below physical per-core VMEM.
    itemsize = jnp.dtype(cdt).itemsize
    est = (TM * D_in_p * itemsize * 3                      # x tiles
           + TM * D_out_p * 4 * 2                          # out tiles
           + (D_in_p * H_p + H_p * D_out_p) * itemsize * 2  # weights
           + (H_p + D_out_p) * 4 * 2                       # biases
           + TM * H_p * 4)                                 # hidden intermediate
    vmem_limit = int(min(_vmem_cap_bytes() - (8 << 20),
                         max(16 << 20, int(est * 1.25) + (2 << 20))))

    # TODO(synk): for weight footprints that exceed per-core VMEM (notably
    # v7x's 64 MiB), add an N-tiling grid axis over D_out_p (and K-tiling with
    # an accumulator) instead of keeping both weight matrices fully resident.

    args = (xp, w1p, b1p, w2p, b2p)
    try:
        out_p = _build_mlp_call(TM, D_in_p, H_p, D_out_p, B_p, grid_steps,
                                vmem_limit, optimized=True)(*args)
    except Exception:
        # pipeline_mode buffering hints not supported on this jax build ->
        # fall back to default (double-buffered) BlockSpecs.
        out_p = _build_mlp_call(TM, D_in_p, H_p, D_out_p, B_p, grid_steps,
                                vmem_limit, optimized=False)(*args)

    # Slice off batch / output-feature padding.
    return out_p[:B, :D_out]


def init_linear_params(key, in_features, out_features):
    """Deterministic init matching nn.Linear's U(-1/sqrt(fan_in), 1/sqrt(fan_in)).
    Weight is returned transposed to (in_features, out_features)."""
    kw, kb = jax.random.split(key)
    bound = 1.0 / jnp.sqrt(jnp.float32(in_features))
    w = jax.random.uniform(kw, (in_features, out_features), jnp.float32,
                           minval=-bound, maxval=bound)
    b = jax.random.uniform(kb, (1, out_features), jnp.float32,
                           minval=-bound, maxval=bound)
    return w, b


# TODO(synk): train_step (BCELoss + SGD backward/update) is a training loop,
# not a forward-pass op; only the forward pass is implemented as a kernel.

if __name__ == "__main__":
    # Small shapes consistent with the module's forward: x (batch, input_dim)
    batch, input_dim, hidden_dim, output_dim = 8, 16, 32, 4

    key = jax.random.PRNGKey(0)
    kx, k1, k2 = jax.random.split(key, 3)

    x = jax.random.normal(kx, (batch, input_dim), jnp.float32)
    w1, b1 = init_linear_params(k1, input_dim, hidden_dim)
    w2, b2 = init_linear_params(k2, hidden_dim, output_dim)

    # f32 path (matches nn.Linear semantics).
    params = prepare_mlp_params(w1, b1, w2, b2)
    out = mlp_forward(x, params)
    jax.block_until_ready(out)

    ref = jax.nn.sigmoid(jax.nn.sigmoid(x @ w1 + b1) @ w2 + b2)
    assert out.shape == (batch, output_dim)
    assert jnp.allclose(out, ref, atol=2e-3, rtol=2e-3), "f32 mismatch vs reference"

    # Optional bf16-MXU path (halves weight DMA bytes, native MXU throughput
    # on v6e/v7x); f32 accumulation + f32 epilogue, looser tolerance.
    params_bf16 = prepare_mlp_params(w1, b1, w2, b2, compute_dtype=jnp.bfloat16)
    out_bf16 = mlp_forward(x, params_bf16)
    jax.block_until_ready(out_bf16)
    assert jnp.allclose(out_bf16, ref, atol=3e-2, rtol=3e-2), "bf16 mismatch vs reference"

    print("KERNEL_OK")
</pallas_src>

<mosaic_0001>
module attributes {stable_mosaic.version = 11 : i64} {
  func.func @mlp_kernel(%arg0: i32, %arg1: memref<8x128xf32, #tpu.memory_space<vmem>>, %arg2: memref<128x128xf32, #tpu.memory_space<vmem>>, %arg3: memref<1x128xf32, #tpu.memory_space<vmem>>, %arg4: memref<128x128xf32, #tpu.memory_space<vmem>>, %arg5: memref<1x128xf32, #tpu.memory_space<vmem>>, %arg6: memref<8x128xf32, #tpu.memory_space<vmem>>) attributes {dimension_semantics = [#tpu.dimension_semantics<arbitrary>], iteration_bounds = array<i64: 1>, scalar_prefetch = 0 : i64, scratch_operands = 0 : i64, tpu.core_type = #tpu.core_type<tc>, window_params = [{transform_indices = @transform_0, window_bounds = array<i64: 8, 128>}, {pipeline_mode = #tpu.pipeline_mode<synchronous>, transform_indices = @transform_1, window_bounds = array<i64: 128, 128>}, {pipeline_mode = #tpu.pipeline_mode<synchronous>, transform_indices = @transform_2, window_bounds = array<i64: 1, 128>}, {pipeline_mode = #tpu.pipeline_mode<synchronous>, transform_indices = @transform_3, window_bounds = array<i64: 128, 128>}, {pipeline_mode = #tpu.pipeline_mode<synchronous>, transform_indices = @transform_4, window_bounds = array<i64: 1, 128>}, {transform_indices = @transform_5, window_bounds = array<i64: 8, 128>}]} {
    %c0 = arith.constant 0 : index
    %c0_0 = arith.constant 0 : index
    %0 = vector.load %arg1[%c0, %c0_0] : memref<8x128xf32, #tpu.memory_space<vmem>>, vector<8x128xf32>
    %c0_1 = arith.constant 0 : index
    %c0_2 = arith.constant 0 : index
    %1 = vector.load %arg2[%c0_1, %c0_2] : memref<128x128xf32, #tpu.memory_space<vmem>>, vector<128x128xf32>
    %cst = arith.constant dense<0.000000e+00> : vector<8x128xf32>
    %2 = tpu.matmul %0, %1, %cst {dimension_numbers = #tpu.dot_dimension_numbers<[1], [0], [0], [1], [0, 0, 1, 1], [], []>} : vector<8x128xf32>, vector<128x128xf32>, vector<8x128xf32> -> vector<8x128xf32>
    %c0_3 = arith.constant 0 : index
    %c0_4 = arith.constant 0 : index
    %3 = vector.load %arg3[%c0_3, %c0_4] : memref<1x128xf32, #tpu.memory_space<vmem>>, vector<1x128xf32>
    %4 = vector.broadcast %3 : vector<1x128xf32> to vector<8x128xf32>
    %5 = arith.addf %2, %4 : vector<8x128xf32>
    %cst_5 = arith.constant 5.000000e-01 : f32
    %6 = vector.broadcast %cst_5 : f32 to vector<8x128xf32>
    %7 = arith.mulf %6, %5 : vector<8x128xf32>
    %8 = math.tanh %7 : vector<8x128xf32>
    %cst_6 = arith.constant 1.000000e+00 : f32
    %9 = vector.broadcast %cst_6 : f32 to vector<8x128xf32>
    %10 = arith.addf %8, %9 : vector<8x128xf32>
    %cst_7 = arith.constant 5.000000e-01 : f32
    %11 = vector.broadcast %cst_7 : f32 to vector<8x128xf32>
    %12 = arith.mulf %11, %10 : vector<8x128xf32>
    %c0_8 = arith.constant 0 : index
    %c0_9 = arith.constant 0 : index
    %13 = vector.load %arg4[%c0_8, %c0_9] : memref<128x128xf32, #tpu.memory_space<vmem>>, vector<128x128xf32>
    %cst_10 = arith.constant dense<0.000000e+00> : vector<8x128xf32>
    %14 = tpu.matmul %12, %13, %cst_10 {dimension_numbers = #tpu.dot_dimension_numbers<[1], [0], [0], [1], [0, 0, 1, 1], [], []>} : vector<8x128xf32>, vector<128x128xf32>, vector<8x128xf32> -> vector<8x128xf32>
    %c0_11 = arith.constant 0 : index
    %c0_12 = arith.constant 0 : index
    %15 = vector.load %arg5[%c0_11, %c0_12] : memref<1x128xf32, #tpu.memory_space<vmem>>, vector<1x128xf32>
    %16 = vector.broadcast %15 : vector<1x128xf32> to vector<8x128xf32>
    %17 = arith.addf %14, %16 : vector<8x128xf32>
    %cst_13 = arith.constant 5.000000e-01 : f32
    %18 = vector.broadcast %cst_13 : f32 to vector<8x128xf32>
    %19 = arith.mulf %18, %17 : vector<8x128xf32>
    %20 = math.tanh %19 : vector<8x128xf32>
    %cst_14 = arith.constant 1.000000e+00 : f32
    %21 = vector.broadcast %cst_14 : f32 to vector<8x128xf32>
    %22 = arith.addf %20, %21 : vector<8x128xf32>
    %cst_15 = arith.constant 5.000000e-01 : f32
    %23 = vector.broadcast %cst_15 : f32 to vector<8x128xf32>
    %24 = arith.mulf %23, %22 : vector<8x128xf32>
    %c0_16 = arith.constant 0 : index
    %c0_17 = arith.constant 0 : index
    %25 = vector.load %arg6[%c0_16, %c0_17] : memref<8x128xf32, #tpu.memory_space<vmem>>, vector<8x128xf32>
    tpu.vector_store %arg6[%c0_16, %c0_17], %24 {strides = array<i32>} : memref<8x128xf32, #tpu.memory_space<vmem>>, vector<8x128xf32>,
    return
  }
  func.func @transform_0(%arg0: i32) -> (i32, i32) {
    %c0_i32 = arith.constant 0 : i32
    %c0_i32_0 = arith.constant 0 : i32
    return %arg0, %c0_i32 : i32, i32
  }
  func.func @transform_1(%arg0: i32) -> (i32, i32) {
    %c0_i32 = arith.constant 0 : i32
    %c0_i32_0 = arith.constant 0 : i32
    %c0_i32_1 = arith.constant 0 : i32
    return %c0_i32, %c0_i32_0 : i32, i32
  }
  func.func @transform_2(%arg0: i32) -> (i32, i32) {
    %c0_i32 = arith.constant 0 : i32
    %c0_i32_0 = arith.constant 0 : i32
    %c0_i32_1 = arith.constant 0 : i32
    return %c0_i32, %c0_i32_0 : i32, i32
  }
  func.func @transform_3(%arg0: i32) -> (i32, i32) {
    %c0_i32 = arith.constant 0 : i32
    %c0_i32_0 = arith.constant 0 : i32
    %c0_i32_1 = arith.constant 0 : i32
    return %c0_i32, %c0_i32_0 : i32, i32
  }
  func.func @transform_4(%arg0: i32) -> (i32, i32) {
    %c0_i32 = arith.constant 0 : i32
    %c0_i32_0 = arith.constant 0 : i32
    %c0_i32_1 = arith.constant 0 : i32
    return %c0_i32, %c0_i32_0 : i32, i32
  }
  func.func @transform_5(%arg0: i32) -> (i32, i32) {
    %c0_i32 = arith.constant 0 : i32
    %c0_i32_0 = arith.constant 0 : i32
    return %arg0, %c0_i32 : i32, i32
  }
}

module attributes {stable_mosaic.version = 11 : i64} {
  func.func @mlp_kernel(%arg0: i32, %arg1: memref<8x128xf32, #tpu.memory_space<vmem>>, %arg2: memref<128x128xf32, #tpu.memory_space<vmem>>, %arg3: memref<1x128xf32, #tpu.memory_space<vmem>>, %arg4: memref<128x128xf32, #tpu.memory_space<vmem>>, %arg5: memref<1x128xf32, #tpu.memory_space<vmem>>, %arg6: memref<8x128xf32, #tpu.memory_space<vmem>>) attributes {dimension_semantics = [#tpu.dimension_semantics<arbitrary>], iteration_bounds = array<i64: 1>, scalar_prefetch = 0 : i64, scratch_operands = 0 : i64, tpu.core_type = #tpu.core_type<tc>, window_params = [{transform_indices = @transform_0, window_bounds = array<i64: 8, 128>}, {pipeline_mode = #tpu.pipeline_mode<synchronous>, transform_indices = @transform_1, window_bounds = array<i64: 128, 128>}, {pipeline_mode = #tpu.pipeline_mode<synchronous>, transform_indices = @transform_2, window_bounds = array<i64: 1, 128>}, {pipeline_mode = #tpu.pipeline_mode<synchronous>, transform_indices = @transform_3, window_bounds = array<i64: 128, 128>}, {pipeline_mode = #tpu.pipeline_mode<synchronous>, transform_indices = @transform_4, window_bounds = array<i64: 1, 128>}, {transform_indices = @transform_5, window_bounds = array<i64: 8, 128>}]} {
    %c0 = arith.constant 0 : index
    %c0_0 = arith.constant 0 : index
    %0 = vector.load %arg1[%c0, %c0_0] : memref<8x128xf32, #tpu.memory_space<vmem>>, vector<8x128xf32>
    %c0_1 = arith.constant 0 : index
    %c0_2 = arith.constant 0 : index
    %1 = vector.load %arg2[%c0_1, %c0_2] : memref<128x128xf32, #tpu.memory_space<vmem>>, vector<128x128xf32>
    %cst = arith.constant dense<0.000000e+00> : vector<8x128xf32>
    %2 = tpu.matmul %0, %1, %cst {dimension_numbers = #tpu.dot_dimension_numbers<[1], [0], [0], [1], [0, 0, 1, 1], [], []>} : vector<8x128xf32>, vector<128x128xf32>, vector<8x128xf32> -> vector<8x128xf32>
    %c0_3 = arith.constant 0 : index
    %c0_4 = arith.constant 0 : index
    %3 = vector.load %arg3[%c0_3, %c0_4] : memref<1x128xf32, #tpu.memory_space<vmem>>, vector<1x128xf32>
    %4 = vector.broadcast %3 : vector<1x128xf32> to vector<8x128xf32>
    %5 = arith.addf %2, %4 : vector<8x128xf32>
    %cst_5 = arith.constant 5.000000e-01 : f32
    %6 = vector.broadcast %cst_5 : f32 to vector<8x128xf32>
    %7 = arith.mulf %6, %5 : vector<8x128xf32>
    %8 = math.tanh %7 : vector<8x128xf32>
    %cst_6 = arith.constant 1.000000e+00 : f32
    %9 = vector.broadcast %cst_6 : f32 to vector<8x128xf32>
    %10 = arith.addf %8, %9 : vector<8x128xf32>
    %cst_7 = arith.constant 5.000000e-01 : f32
    %11 = vector.broadcast %cst_7 : f32 to vector<8x128xf32>
    %12 = arith.mulf %11, %10 : vector<8x128xf32>
    %c0_8 = arith.constant 0 : index
    %c0_9 = arith.constant 0 : index
    %13 = vector.load %arg4[%c0_8, %c0_9] : memref<128x128xf32, #tpu.memory_space<vmem>>, vector<128x128xf32>
    %cst_10 = arith.constant dense<0.000000e+00> : vector<8x128xf32>
    %14 = tpu.matmul %12, %13, %cst_10 {dimension_numbers = #tpu.dot_dimension_numbers<[1], [0], [0], [1], [0, 0, 1, 1], [], []>} : vector<8x128xf32>, vector<128x128xf32>, vector<8x128xf32> -> vector<8x128xf32>
    %c0_11 = arith.constant 0 : index
    %c0_12 = arith.constant 0 : index
    %15 = vector.load %arg5[%c0_11, %c0_12] : memref<1x128xf32, #tpu.memory_space<vmem>>, vector<1x128xf32>
    %16 = vector.broadcast %15 : vector<1x128xf32> to vector<8x128xf32>
    %17 = arith.addf %14, %16 : vector<8x128xf32>
    %cst_13 = arith.constant 5.000000e-01 : f32
    %18 = vector.broadcast %cst_13 : f32 to vector<8x128xf32>
    %19 = arith.mulf %18, %17 : vector<8x128xf32>
    %20 = math.tanh %19 : vector<8x128xf32>
    %cst_14 = arith.constant 1.000000e+00 : f32
    %21 = vector.broadcast %cst_14 : f32 to vector<8x128xf32>
    %22 = arith.addf %20, %21 : vector<8x128xf32>
    %cst_15 = arith.constant 5.000000e-01 : f32
    %23 = vector.broadcast %cst_15 : f32 to vector<8x128xf32>
    %24 = arith.mulf %23, %22 : vector<8x128xf32>
    %c0_16 = arith.constant 0 : index
    %c0_17 = arith.constant 0 : index
    %25 = vector.load %arg6[%c0_16, %c0_17] : memref<8x128xf32, #tpu.memory_space<vmem>>, vector<8x128xf32>
    tpu.vector_store %arg6[%c0_16, %c0_17], %24 {strides = array<i32>} : memref<8x128xf32, #tpu.memory_space<vmem>>, vector<8x128xf32>,
    return
  }
  func.func @transform_0(%arg0: i32) -> (i32, i32) {
    %c0_i32 = arith.constant 0 : i32
    %c0_i32_0 = arith.constant 0 : i32
    return %arg0, %c0_i32 : i32, i32
  }
  func.func @transform_1(%arg0: i32) -> (i32, i32) {
    %c0_i32 = arith.constant 0 : i32
    %c0_i32_0 = arith.constant 0 : i32
    %c0_i32_1 = arith.constant 0 : i32
    return %c0_i32, %c0_i32_0 : i32, i32
  }
  func.func @transform_2(%arg0: i32) -> (i32, i32) {
    %c0_i32 = arith.constant 0 : i32
    %c0_i32_0 = arith.constant 0 : i32
    %c0_i32_1 = arith.constant 0 : i32
    return %c0_i32, %c0_i32_0 : i32, i32
  }
  func.func @transform_3(%arg0: i32) -> (i32, i32) {
    %c0_i32 = arith.constant 0 : i32
    %c0_i32_0 = arith.constant 0 : i32
    %c0_i32_1 = arith.constant 0 : i32
    return %c0_i32, %c0_i32_0 : i32, i32
  }
  func.func @transform_4(%arg0: i32) -> (i32, i32) {
    %c0_i32 = arith.constant 0 : i32
    %c0_i32_0 = arith.constant 0 : i32
    %c0_i32_1 = arith.constant 0 : i32
    return %c0_i32, %c0_i32_0 : i32, i32
  }
  func.func @transform_5(%arg0: i32) -> (i32, i32) {
    %c0_i32 = arith.constant 0 : i32
    %c0_i32_0 = arith.constant 0 : i32
    return %arg0, %c0_i32 : i32, i32
  }
}

</mosaic_0001>

<bundles_post_ra>
// kernel: tpu_custom_call.1
= control target key start
LH: loop header
LB: loop body
LE: loop exit
PB: predicated region body
PF: predicated region fallthrough
CT: control target
= control target key end

     0   :  { %10 = vsyncpa [#allocation3], 0  ;;  %s648_s0 = inlined_call_operand.hbm [shape: f32[8,128], index: 0, kind: input, shape index: {}]   ;;  %s649_s1 = inlined_call_operand.hbm [shape: f32[128,128], index: 1, kind: input, shape index: {}]   ;;  %s650_s2 = inlined_call_operand.vmem [shape: f32[1,128], index: 2, kind: input, shape index: {}]   ;;  %s651_s3 = inlined_call_operand.hbm [shape: f32[128,128], index: 3, kind: input, shape index: {}]   ;;  %s652_s4 = inlined_call_operand.vmem [shape: f32[1,128], index: 4, kind: input, shape index: {}]   ;;  %s653_s5 = inlined_call_operand.hbm [shape: f32[8,128], index: 5, kind: output, shape index: {}]  }
   0x1   :  { %11 = vsyncpa [#allocation6], 0 }
   0x2   :  { %12 = vsyncpa [#allocation4], 0  ;;  %s533_s18 = smov [#allocation5]   ;;  %s439_s22 = scalar_lea.hbm %s649_s1, 2048 }
   0x3   :  { %s28_s19 = sshll.u32 %s533_s18, 4  ;;  %p440_p0 = scmp.ne.s32.totalorder %s649_s1, %s439_s22  ;;  %s29_s19 = int_to_ptr.vmem [resolvable:$true] %s28_s19 }
   0x4   :  { %p443_p1 = scmp.lt.u32.totalorder %s439_s22, %s649_s1 }
   0x6   :  { %p445_p2 = pnand %p443_p1, %p440_p0 }
   0x8   :  { %448 = shalt.err (!%p445_p2)
}
   0x9   :  { %s449_s27 = scalar_lea.vmem %s29_s19, 2048  ;;  %p454_p4 = scmp.lt.s32.totalorder %s29_s19, %s29_s19 }
   0xa   :  { %p450_p3 = scmp.ne.s32.totalorder %s29_s19, %s449_s27  ;;  %p455_p5 = scmp.lt.s32.totalorder %s449_s27, %s449_s27 }
   0xc   :  { %p456_p6 = por %p455_p5, %p454_p4 }
   0xe   :  { %p457_p7 = pnand %p456_p6, %p450_p3 }
  0x10   :  { %460 = shalt.err (!%p457_p7)
}
  0x11   :  { %s534_s28 = smov 128   ;;  %s535_s29 = smov 8  }
  0x12   :  { %34 = dma.hbm_to_vmem [thread:$0]  %s649_s1, 2048, %s29_s19, [#allocation6], %s534_s28, %s534_s28, %s535_s29  }
  0x13   :  { %s536_s7 = smov [#allocation2]   ;;  %s537_s9 = smov [#allocation7]  }
  0x14   :  { %s19_s8 = sshll.u32 %s536_s7, 4  ;;  %s42_s10 = sshll.u32 %s537_s9, 4  ;;  %s20_s8 = int_to_ptr.vmem [resolvable:$true] %s19_s8  ;;  %s43_s10 = int_to_ptr.vmem [resolvable:$true] %s42_s10 }
  0x15   :  { %s461_s13 = scalar_lea.hbm %s648_s0, 128 }
  0x16   :  { %p462_p8 = scmp.ne.s32.totalorder %s648_s0, %s461_s13  ;;  %p465_p9 = scmp.lt.u32.totalorder %s461_s13, %s648_s0 }
  0x18   :  { %p467_p10 = pnand %p465_p9, %p462_p8 }
  0x1a   :  { %470 = shalt.err (!%p467_p10)
}
  0x1b   :  { %s471_s1 = scalar_lea.vmem %s20_s8, 128  ;;  %p476_p12 = scmp.lt.s32.totalorder %s20_s8, %s20_s8 }
  0x1c   :  { %p472_p11 = scmp.ne.s32.totalorder %s20_s8, %s471_s1  ;;  %p477_p13 = scmp.lt.s32.totalorder %s471_s1, %s471_s1 }
  0x1e   :  { %p478_p0 = por %p477_p13, %p476_p12 }
  0x20   :  { %p479_p1 = pnand %p478_p0, %p472_p11 }
  0x22   :  { %482 = shalt.err (!%p479_p1)
}
  0x23   :  { %22 = dma.hbm_to_vmem [thread:$0]  %s648_s0, 128, %s20_s8, [#allocation3]  }
  0x24   :  { %s483_s22 = scalar_lea.hbm %s651_s3, 2048 }
  0x25   :  { %p484_p2 = scmp.ne.s32.totalorder %s651_s3, %s483_s22  ;;  %p487_p3 = scmp.lt.u32.totalorder %s483_s22, %s651_s3 }
  0x27   :  { %p489_p4 = pnand %p487_p3, %p484_p2 }
  0x29   :  { %492 = shalt.err (!%p489_p4)
}
  0x2a   :  { %s493_s27 = scalar_lea.vmem %s43_s10, 2048  ;;  %p498_p6 = scmp.lt.s32.totalorder %s43_s10, %s43_s10 }
  0x2b   :  { %p494_p5 = scmp.ne.s32.totalorder %s43_s10, %s493_s27  ;;  %p499_p7 = scmp.lt.s32.totalorder %s493_s27, %s493_s27 }
  0x2d   :  { %p500_p8 = por %p499_p7, %p498_p6 }
  0x2f   :  { %p501_p9 = pnand %p500_p8, %p494_p5 }
  0x31   :  { %504 = shalt.err (!%p501_p9)
}
  0x32   :  { %48 = dma.hbm_to_vmem [thread:$0]  %s651_s3, 2048, %s43_s10, [#allocation6], %s534_s28, %s534_s28, %s535_s29  }
  0x33   :  { %527 = dma.done.wait [#allocation3], 128  }
  0x34   :  { %528 = vsyncadd [#allocation3], 4294967168 }
  0x35   :  { %529 = dma.done.wait [#allocation6], 4096  }
  0x36   :  { %530 = vsyncadd [#allocation6], 4294963200  ;;  %v538_v0 = vmov 0.0|0.0   ;;  %vm539_vm0 = vmmov 0   ;;  %v540_v1 = vmov 0.0   ;;  %v61_v2 = vld [vmem:[#allocation5] sm:$0xff] }
  0x37   :  { %378 = vmatprep.subr.bf16.mxu0 %v538_v0  ;;  %340 = vmatprep.mubr.msk.f32.mxu0 %vm539_vm0, %v540_v1  ;;  %v62_v3 = vld [vmem:[#allocation5 + $0x8] sm:$0xff]  ;;  %v63_v4 = vld [vmem:[#allocation5 + $0x10] sm:$0xff]  ;;  %v64_v6 = vld [vmem:[#allocation5 + $0x18] sm:$0xff] }
  0x38   :  { %402 = vmatprep.subr.bf16.mxu1 %v538_v0  ;;  %375 = vmatprep.mubr.msk.f32.mxu1 %vm539_vm0, %v540_v1  ;;  %v379_v5 = vpack.c.bf16 %v62_v3, %v61_v2  ;;  %v382_v7 = vpack.c.bf16 %v64_v6, %v63_v4  ;;  %v65_v8 = vld [vmem:[#allocation5 + $0x20] sm:$0xff]  ;;  %v66_v9 = vld [vmem:[#allocation5 + $0x28] sm:$0xff]  ;;  %v160_v12 = vld [vmem:[#allocation7 + $0x10] sm:$0xff] }
  0x39   :  { %v158_v10 = vld [vmem:[#allocation7] sm:$0xff]  ;;  %v159_v11 = vld [vmem:[#allocation7 + $0x8] sm:$0xff]  ;;  %v161_v13 = vld [vmem:[#allocation7 + $0x18] sm:$0xff]  ;;  %v385_v14 = vpack.c.bf16 %v66_v9, %v65_v8 }
  0x3a   :  { %380 = vmatpush3.bf16.msra.mxu0 %v379_v5  ;;  %v403_v15 = vpack.c.bf16 %v159_v11, %v158_v10  ;;  %v67_v16 = vld [vmem:[#allocation5 + $0x30] sm:$0xff]  ;;  %v68_v17 = vld [vmem:[#allocation5 + $0x38] sm:$0xff]  ;;  %v406_v18 = vpack.c.bf16 %v161_v13, %v160_v12  ;;  %v162_v19 = vld [vmem:[#allocation7 + $0x20] sm:$0xff] }
  0x3b   :  { %381 = vmatprep.subr.bf16.mxu0 %v538_v0  ;;  %v163_v20 = vld [vmem:[#allocation7 + $0x28] sm:$0xff]  ;;  %v388_v21 = vpack.c.bf16 %v68_v17, %v67_v16  ;;  %v69_v22 = vld [vmem:[#allocation5 + $0x40] sm:$0xff]  ;;  %v71_v26 = vld [vmem:[#allocation5 + $0x50] sm:$0xff] }
  0x3c   :  { %404 = vmatpush3.bf16.msra.mxu1 %v403_v15  ;;  %v70_v23 = vld [vmem:[#allocation5 + $0x48] sm:$0xff]  ;;  %v409_v24 = vpack.c.bf16 %v163_v20, %v162_v19  ;;  %v72_v27 = vld [vmem:[#allocation5 + $0x58] sm:$0xff]  ;;  %v73_v29 = vld [vmem:[#allocation5 + $0x60] sm:$0xff] }
  0x3d   :  { %405 = vmatprep.subr.bf16.mxu1 %v538_v0  ;;  %v391_v25 = vpack.c.bf16 %v70_v23, %v69_v22  ;;  %v394_v28 = vpack.c.bf16 %v72_v27, %v71_v26  ;;  %v74_v30 = vld [vmem:[#allocation5 + $0x68] sm:$0xff]  ;;  %v75_v32 = vld [vmem:[#allocation5 + $0x70] sm:$0xff]  ;;  %v76_v33 = vld [vmem:[#allocation5 + $0x78] sm:$0xff] }
  0x3e   :  { %383 = vmatpush3.bf16.msra.mxu0 %v382_v7  ;;  %v397_v31 = vpack.c.bf16 %v74_v30, %v73_v29  ;;  %v400_v34 = vpack.c.bf16 %v76_v33, %v75_v32  ;;  %v60_v35 = vld [vmem:[#allocation2] sm:$0xff]  ;;  %v164_v36 = vld [vmem:[#allocation7 + $0x30] sm:$0xff]  ;;  %v166_v39 = vld [vmem:[#allocation7 + $0x40] sm:$0xff] }
  0x3f   :  { %384 = vmatprep.subr.bf16.mxu0 %v538_v0  ;;  %v165_v37 = vld [vmem:[#allocation7 + $0x38] sm:$0xff]  ;;  %v167_v40 = vld [vmem:[#allocation7 + $0x48] sm:$0xff]  ;;  %v168_v42 = vld [vmem:[#allocation7 + $0x50] sm:$0xff] }
  0x40   :  { %407 = vmatpush3.bf16.msra.mxu1 %v406_v18  ;;  %v412_v38 = vpack.c.bf16 %v165_v37, %v164_v36  ;;  %v415_v41 = vpack.c.bf16 %v167_v40, %v166_v39  ;;  %v169_v43 = vld [vmem:[#allocation7 + $0x58] sm:$0xff]  ;;  %v170_v45 = vld [vmem:[#allocation7 + $0x60] sm:$0xff]  ;;  %v171_v46 = vld [vmem:[#allocation7 + $0x68] sm:$0xff] }
  0x41   :  { %408 = vmatprep.subr.bf16.mxu1 %v538_v0  ;;  %v418_v44 = vpack.c.bf16 %v169_v43, %v168_v42  ;;  %v421_v47 = vpack.c.bf16 %v171_v46, %v170_v45  ;;  %v172_v48 = vld [vmem:[#allocation7 + $0x70] sm:$0xff]  ;;  %v173_v49 = vld [vmem:[#allocation7 + $0x78] sm:$0xff] }
  0x42   :  { %386 = vmatpush3.bf16.msra.mxu0 %v385_v14  ;;  %v424_v50 = vpack.c.bf16 %v173_v49, %v172_v48  ;;  %v272_v51 = vld [vmem:[%s650_s2] ss:$0 sm:$0xff]  ;;  %s541_s2 = smov [#allocation8]  }
  0x43   :  { %387 = vmatprep.subr.bf16.mxu0 %v538_v0  ;;  %v273_v59 = vld [vmem:[%s652_s4] ss:$0 sm:$0xff]  ;;  %s262_s7 = sshll.u32 %s541_s2, 4  ;;  %s263_s7 = int_to_ptr.vmem [resolvable:$true] %s262_s7 }
  0x44   :  { %410 = vmatpush3.bf16.msra.mxu1 %v409_v24  ;;  %s505_s8 = scalar_lea.vmem %s263_s7, 128  ;;  %p510_p11 = scmp.lt.s32.totalorder %s263_s7, %s263_s7 }
  0x45   :  { %411 = vmatprep.subr.bf16.mxu1 %v538_v0  ;;  %p506_p10 = scmp.ne.s32.totalorder %s263_s7, %s505_s8  ;;  %p511_p12 = scmp.lt.s32.totalorder %s505_s8, %s505_s8 }
  0x46   :  { %389 = vmatpush3.bf16.msra.mxu0 %v388_v21 }
  0x47   :  { %390 = vmatprep.subr.bf16.mxu0 %v538_v0  ;;  %p512_p13 = por %p511_p12, %p510_p11 }
  0x48   :  { %413 = vmatpush3.bf16.msra.mxu1 %v412_v38 }
  0x49   :  { %414 = vmatprep.subr.bf16.mxu1 %v538_v0  ;;  %p513_p0 = pnand %p512_p13, %p506_p10 }
  0x4a   :  { %392 = vmatpush3.bf16.msra.mxu0 %v391_v25 }
  0x4b   :  { %393 = vmatprep.subr.bf16.mxu0 %v538_v0 }
  0x4c   :  { %416 = vmatpush3.bf16.msra.mxu1 %v415_v41 }
  0x4d   :  { %417 = vmatprep.subr.bf16.mxu1 %v538_v0 }
  0x4e   :  { %395 = vmatpush3.bf16.msra.mxu0 %v394_v28 }
  0x4f   :  { %396 = vmatprep.subr.bf16.mxu0 %v538_v0 }
  0x50   :  { %419 = vmatpush3.bf16.msra.mxu1 %v418_v44 }
  0x51   :  { %420 = vmatprep.subr.bf16.mxu1 %v538_v0 }
  0x52   :  { %398 = vmatpush3.bf16.msra.mxu0 %v397_v31 }
  0x53   :  { %399 = vmatprep.subr.bf16.mxu0 %v538_v0 }
  0x54   :  { %422 = vmatpush3.bf16.msra.mxu1 %v421_v47 }
  0x55   :  { %423 = vmatprep.subr.bf16.mxu1 %v538_v0 }
  0x56   :  { %401 = vmatpush3.bf16.msra.mxu0 %v400_v34 }
  0x58   :  { %425 = vmatpush3.bf16.msra.mxu1 %v424_v50 }
  0x59   :  { %341 = vmatmul.mubr.f32.vlgmr.msra.gmra.mrb[0].mxu0 %v60_v35 }
 0x12c   :  { %v150_v52 = vpop.f32.mrb[0].mxu0 }
 0x12d   :  { %v151_v53 = vadd.f32 %v272_v51, %v150_v52  ;;  %v342_v54 = vpop.f32.mrb[1].mxu0 }
 0x12f   :  { %v154_v55 = vmul.f32 0.5, %v151_v53 }
 0x131   :  { %435 = vtanh.f32 %v154_v55 }
 0x13b   :  { %v436_v56 = vpop.eup %435 }
 0x13c   :  { %v156_v57 = vadd.f32 1.0, %v436_v56 }
 0x13e   :  { %v157_v58 = vmul.f32 0.5, %v156_v57 }
 0x140   :  { %376 = vmatmul.mubr.f32.vlgmr.msra.gmra.mrb[0].mxu1 %v157_v58 }
 0x213   :  { %v247_v60 = vpop.f32.mrb[0].mxu1 }
 0x214   :  { %v248_v61 = vadd.f32 %v273_v59, %v247_v60  ;;  %v377_v62 = vpop.f32.mrb[1].mxu1 }
 0x216   :  { %v251_v63 = vmul.f32 0.5, %v248_v61 }
 0x218   :  { %437 = vtanh.f32 %v251_v63 }
 0x222   :  { %v438_v0 = vpop.eup %437 }
 0x223   :  { %v253_v1 = vadd.f32 1.0, %v438_v0 }
 0x225   :  { %v254_v2 = vmul.f32 0.5, %v253_v1 }
 0x227   :  { %255 = vst [vmem:[#allocation8] sm:$0xff] %v254_v2 }
 0x228   :  { %516 = shalt.err (!%p513_p0)
}
 0x229   :  { %s517_s10 = scalar_lea.hbm %s653_s5, 128 }
 0x22a   :  { %p518_p1 = scmp.ne.s32.totalorder %s653_s5, %s517_s10  ;;  %p521_p2 = scmp.lt.u32.totalorder %s517_s10, %s653_s5 }
 0x22c   :  { %p523_p3 = pnand %p521_p2, %p518_p1 }
 0x22e   :  { %526 = shalt.err (!%p523_p3)
}
 0x22f   :  { %265 = dma.vmem_to_hbm [thread:$0]  %s263_s7, 128, %s653_s5, [#allocation4]  }
 0x230   :  { %531 = dma.done.wait [#allocation4], 128  }
 0x231   :  { %532 = vsyncadd [#allocation4], 4294967168 }
 0x232   :  { %269 = vsyncpa [#allocation3], 1 }
 0x233   :  { %270 = vsyncpa [#allocation6], 1 }
 0x234   :  { %271 = vsyncpa [#allocation4], 1 }

// kernel: tpu_custom_call.1
= control target key start
LH: loop header
LB: loop body
LE: loop exit
PB: predicated region body
PF: predicated region fallthrough
CT: control target
= control target key end

     0   :  { %10 = vsyncpa [#allocation3], 0  ;;  %s648_s0 = inlined_call_operand.hbm [shape: f32[8,128], index: 0, kind: input, shape index: {}]   ;;  %s649_s1 = inlined_call_operand.hbm [shape: f32[128,128], index: 1, kind: input, shape index: {}]   ;;  %s650_s2 = inlined_call_operand.vmem [shape: f32[1,128], index: 2, kind: input, shape index: {}]   ;;  %s651_s3 = inlined_call_operand.hbm [shape: f32[128,128], index: 3, kind: input, shape index: {}]   ;;  %s652_s4 = inlined_call_operand.vmem [shape: f32[1,128], index: 4, kind: input, shape index: {}]   ;;  %s653_s5 = inlined_call_operand.hbm [shape: f32[8,128], index: 5, kind: output, shape index: {}]  }
   0x1   :  { %11 = vsyncpa [#allocation6], 0 }
   0x2   :  { %12 = vsyncpa [#allocation4], 0  ;;  %s533_s18 = smov [#allocation5]   ;;  %s439_s22 = scalar_lea.hbm %s649_s1, 2048 }
   0x3   :  { %s28_s19 = sshll.u32 %s533_s18, 4  ;;  %p440_p0 = scmp.ne.s32.totalorder %s649_s1, %s439_s22  ;;  %s29_s19 = int_to_ptr.vmem [resolvable:$true] %s28_s19 }
   0x4   :  { %p443_p1 = scmp.lt.u32.totalorder %s439_s22, %s649_s1 }
   0x6   :  { %p445_p2 = pnand %p443_p1, %p440_p0 }
   0x8   :  { %448 = shalt.err (!%p445_p2)
}
   0x9   :  { %s449_s27 = scalar_lea.vmem %s29_s19, 2048  ;;  %p454_p4 = scmp.lt.s32.totalorder %s29_s19, %s29_s19 }
   0xa   :  { %p450_p3 = scmp.ne.s32.totalorder %s29_s19, %s449_s27  ;;  %p455_p5 = scmp.lt.s32.totalorder %s449_s27, %s449_s27 }
   0xc   :  { %p456_p6 = por %p455_p5, %p454_p4 }
   0xe   :  { %p457_p7 = pnand %p456_p6, %p450_p3 }
  0x10   :  { %460 = shalt.err (!%p457_p7)
}
  0x11   :  { %s534_s28 = smov 128   ;;  %s535_s29 = smov 8  }
  0x12   :  { %34 = dma.hbm_to_vmem [thread:$0]  %s649_s1, 2048, %s29_s19, [#allocation6], %s534_s28, %s534_s28, %s535_s29  }
  0x13   :  { %s536_s7 = smov [#allocation2]   ;;  %s537_s9 = smov [#allocation7]  }
  0x14   :  { %s19_s8 = sshll.u32 %s536_s7, 4  ;;  %s42_s10 = sshll.u32 %s537_s9, 4  ;;  %s20_s8 = int_to_ptr.vmem [resolvable:$true] %s19_s8  ;;  %s43_s10 = int_to_ptr.vmem [resolvable:$true] %s42_s10 }
  0x15   :  { %s461_s13 = scalar_lea.hbm %s648_s0, 128 }
  0x16   :  { %p462_p8 = scmp.ne.s32.totalorder %s648_s0, %s461_s13  ;;  %p465_p9 = scmp.lt.u32.totalorder %s461_s13, %s648_s0 }
  0x18   :  { %p467_p10 = pnand %p465_p9, %p462_p8 }
  0x1a   :  { %470 = shalt.err (!%p467_p10)
}
  0x1b   :  { %s471_s1 = scalar_lea.vmem %s20_s8, 128  ;;  %p476_p12 = scmp.lt.s32.totalorder %s20_s8, %s20_s8 }
  0x1c   :  { %p472_p11 = scmp.ne.s32.totalorder %s20_s8, %s471_s1  ;;  %p477_p13 = scmp.lt.s32.totalorder %s471_s1, %s471_s1 }
  0x1e   :  { %p478_p0 = por %p477_p13, %p476_p12 }
  0x20   :  { %p479_p1 = pnand %p478_p0, %p472_p11 }
  0x22   :  { %482 = shalt.err (!%p479_p1)
}
  0x23   :  { %22 = dma.hbm_to_vmem [thread:$0]  %s648_s0, 128, %s20_s8, [#allocation3]  }
  0x24   :  { %s483_s22 = scalar_lea.hbm %s651_s3, 2048 }
  0x25   :  { %p484_p2 = scmp.ne.s32.totalorder %s651_s3, %s483_s22  ;;  %p487_p3 = scmp.lt.u32.totalorder %s483_s22, %s651_s3 }
  0x27   :  { %p489_p4 = pnand %p487_p3, %p484_p2 }
  0x29   :  { %492 = shalt.err (!%p489_p4)
}
  0x2a   :  { %s493_s27 = scalar_lea.vmem %s43_s10, 2048  ;;  %p498_p6 = scmp.lt.s32.totalorder %s43_s10, %s43_s10 }
  0x2b   :  { %p494_p5 = scmp.ne.s32.totalorder %s43_s10, %s493_s27  ;;  %p499_p7 = scmp.lt.s32.totalorder %s493_s27, %s493_s27 }
  0x2d   :  { %p500_p8 = por %p499_p7, %p498_p6 }
  0x2f   :  { %p501_p9 = pnand %p500_p8, %p494_p5 }
  0x31   :  { %504 = shalt.err (!%p501_p9)
}
  0x32   :  { %48 = dma.hbm_to_vmem [thread:$0]  %s651_s3, 2048, %s43_s10, [#allocation6], %s534_s28, %s534_s28, %s535_s29  }
  0x33   :  { %527 = dma.done.wait [#allocation3], 128  }
  0x34   :  { %528 = vsyncadd [#allocation3], 4294967168 }
  0x35   :  { %529 = dma.done.wait [#allocation6], 4096  }
  0x36   :  { %530 = vsyncadd [#allocation6], 4294963200  ;;  %v538_v0 = vmov 0.0|0.0   ;;  %vm539_vm0 = vmmov 0   ;;  %v540_v1 = vmov 0.0   ;;  %v61_v2 = vld [vmem:[#allocation5] sm:$0xff] }
  0x37   :  { %378 = vmatprep.subr.bf16.mxu0 %v538_v0  ;;  %340 = vmatprep.mubr.msk.f32.mxu0 %vm539_vm0, %v540_v1  ;;  %v62_v3 = vld [vmem:[#allocation5 + $0x8] sm:$0xff]  ;;  %v63_v4 = vld [vmem:[#allocation5 + $0x10] sm:$0xff]  ;;  %v64_v6 = vld [vmem:[#allocation5 + $0x18] sm:$0xff] }
  0x38   :  { %402 = vmatprep.subr.bf16.mxu1 %v538_v0  ;;  %375 = vmatprep.mubr.msk.f32.mxu1 %vm539_vm0, %v540_v1  ;;  %v379_v5 = vpack.c.bf16 %v62_v3, %v61_v2  ;;  %v382_v7 = vpack.c.bf16 %v64_v6, %v63_v4  ;;  %v65_v8 = vld [vmem:[#allocation5 + $0x20] sm:$0xff]  ;;  %v66_v9 = vld [vmem:[#allocation5 + $0x28] sm:$0xff]  ;;  %v160_v12 = vld [vmem:[#allocation7 + $0x10] sm:$0xff] }
  0x39   :  { %v158_v10 = vld [vmem:[#allocation7] sm:$0xff]  ;;  %v159_v11 = vld [vmem:[#allocation7 + $0x8] sm:$0xff]  ;;  %v161_v13 = vld [vmem:[#allocation7 + $0x18] sm:$0xff]  ;;  %v385_v14 = vpack.c.bf16 %v66_v9, %v65_v8 }
  0x3a   :  { %380 = vmatpush3.bf16.msra.mxu0 %v379_v5  ;;  %v403_v15 = vpack.c.bf16 %v159_v11, %v158_v10  ;;  %v67_v16 = vld [vmem:[#allocation5 + $0x30] sm:$0xff]  ;;  %v68_v17 = vld [vmem:[#allocation5 + $0x38] sm:$0xff]  ;;  %v406_v18 = vpack.c.bf16 %v161_v13, %v160_v12  ;;  %v162_v19 = vld [vmem:[#allocation7 + $0x20] sm:$0xff] }
  0x3b   :  { %381 = vmatprep.subr.bf16.mxu0 %v538_v0  ;;  %v163_v20 = vld [vmem:[#allocation7 + $0x28] sm:$0xff]  ;;  %v388_v21 = vpack.c.bf16 %v68_v17, %v67_v16  ;;  %v69_v22 = vld [vmem:[#allocation5 + $0x40] sm:$0xff]  ;;  %v71_v26 = vld [vmem:[#allocation5 + $0x50] sm:$0xff] }
  0x3c   :  { %404 = vmatpush3.bf16.msra.mxu1 %v403_v15  ;;  %v70_v23 = vld [vmem:[#allocation5 + $0x48] sm:$0xff]  ;;  %v409_v24 = vpack.c.bf16 %v163_v20, %v162_v19  ;;  %v72_v27 = vld [vmem:[#allocation5 + $0x58] sm:$0xff]  ;;  %v73_v29 = vld [vmem:[#allocation5 + $0x60] sm:$0xff] }
  0x3d   :  { %405 = vmatprep.subr.bf16.mxu1 %v538_v0  ;;  %v391_v25 = vpack.c.bf16 %v70_v23, %v69_v22  ;;  %v394_v28 = vpack.c.bf16 %v72_v27, %v71_v26  ;;  %v74_v30 = vld [vmem:[#allocation5 + $0x68] sm:$0xff]  ;;  %v75_v32 = vld [vmem:[#allocation5 + $0x70] sm:$0xff]  ;;  %v76_v33 = vld [vmem:[#allocation5 + $0x78] sm:$0xff] }
  0x3e   :  { %383 = vmatpush3.bf16.msra.mxu0 %v382_v7  ;;  %v397_v31 = vpack.c.bf16 %v74_v30, %v73_v29  ;;  %v400_v34 = vpack.c.bf16 %v76_v33, %v75_v32  ;;  %v60_v35 = vld [vmem:[#allocation2] sm:$0xff]  ;;  %v164_v36 = vld [vmem:[#allocation7 + $0x30] sm:$0xff]  ;;  %v166_v39 = vld [vmem:[#allocation7 + $0x40] sm:$0xff] }
  0x3f   :  { %384 = vmatprep.subr.bf16.mxu0 %v538_v0  ;;  %v165_v37 = vld [vmem:[#allocation7 + $0x38] sm:$0xff]  ;;  %v167_v40 = vld [vmem:[#allocation7 + $0x48] sm:$0xff]  ;;  %v168_v42 = vld [vmem:[#allocation7 + $0x50] sm:$0xff] }
  0x40   :  { %407 = vmatpush3.bf16.msra.mxu1 %v406_v18  ;;  %v412_v38 = vpack.c.bf16 %v165_v37, %v164_v36  ;;  %v415_v41 = vpack.c.bf16 %v167_v40, %v166_v39  ;;  %v169_v43 = vld [vmem:[#allocation7 + $0x58] sm:$0xff]  ;;  %v170_v45 = vld [vmem:[#allocation7 + $0x60] sm:$0xff]  ;;  %v171_v46 = vld [vmem:[#allocation7 + $0x68] sm:$0xff] }
  0x41   :  { %408 = vmatprep.subr.bf16.mxu1 %v538_v0  ;;  %v418_v44 = vpack.c.bf16 %v169_v43, %v168_v42  ;;  %v421_v47 = vpack.c.bf16 %v171_v46, %v170_v45  ;;  %v172_v48 = vld [vmem:[#allocation7 + $0x70] sm:$0xff]  ;;  %v173_v49 = vld [vmem:[#allocation7 + $0x78] sm:$0xff] }
  0x42   :  { %386 = vmatpush3.bf16.msra.mxu0 %v385_v14  ;;  %v424_v50 = vpack.c.bf16 %v173_v49, %v172_v48  ;;  %v272_v51 = vld [vmem:[%s650_s2] ss:$0 sm:$0xff]  ;;  %s541_s2 = smov [#allocation8]  }
  0x43   :  { %387 = vmatprep.subr.bf16.mxu0 %v538_v0  ;;  %v273_v59 = vld [vmem:[%s652_s4] ss:$0 sm:$0xff]  ;;  %s262_s7 = sshll.u32 %s541_s2, 4  ;;  %s263_s7 = int_to_ptr.vmem [resolvable:$true] %s262_s7 }
  0x44   :  { %410 = vmatpush3.bf16.msra.mxu1 %v409_v24  ;;  %s505_s8 = scalar_lea.vmem %s263_s7, 128  ;;  %p510_p11 = scmp.lt.s32.totalorder %s263_s7, %s263_s7 }
  0x45   :  { %411 = vmatprep.subr.bf16.mxu1 %v538_v0  ;;  %p506_p10 = scmp.ne.s32.totalorder %s263_s7, %s505_s8  ;;  %p511_p12 = scmp.lt.s32.totalorder %s505_s8, %s505_s8 }
  0x46   :  { %389 = vmatpush3.bf16.msra.mxu0 %v388_v21 }
  0x47   :  { %390 = vmatprep.subr.bf16.mxu0 %v538_v0  ;;  %p512_p13 = por %p511_p12, %p510_p11 }
  0x48   :  { %413 = vmatpush3.bf16.msra.mxu1 %v412_v38 }
  0x49   :  { %414 = vmatprep.subr.bf16.mxu1 %v538_v0  ;;  %p513_p0 = pnand %p512_p13, %p506_p10 }
  0x4a   :  { %392 = vmatpush3.bf16.msra.mxu0 %v391_v25 }
  0x4b   :  { %393 = vmatprep.subr.bf16.mxu0 %v538_v0 }
  0x4c   :  { %416 = vmatpush3.bf16.msra.mxu1 %v415_v41 }
  0x4d   :  { %417 = vmatprep.subr.bf16.mxu1 %v538_v0 }
  0x4e   :  { %395 = vmatpush3.bf16.msra.mxu0 %v394_v28 }
  0x4f   :  { %396 = vmatprep.subr.bf16.mxu0 %v538_v0 }
  0x50   :  { %419 = vmatpush3.bf16.msra.mxu1 %v418_v44 }
  0x51   :  { %420 = vmatprep.subr.bf16.mxu1 %v538_v0 }
  0x52   :  { %398 = vmatpush3.bf16.msra.mxu0 %v397_v31 }
  0x53   :  { %399 = vmatprep.subr.bf16.mxu0 %v538_v0 }
  0x54   :  { %422 = vmatpush3.bf16.msra.mxu1 %v421_v47 }
  0x55   :  { %423 = vmatprep.subr.bf16.mxu1 %v538_v0 }
  0x56   :  { %401 = vmatpush3.bf16.msra.mxu0 %v400_v34 }
  0x58   :  { %425 = vmatpush3.bf16.msra.mxu1 %v424_v50 }
  0x59   :  { %341 = vmatmul.mubr.f32.vlgmr.msra.gmra.mrb[0].mxu0 %v60_v35 }
 0x12c   :  { %v150_v52 = vpop.f32.mrb[0].mxu0 }
 0x12d   :  { %v151_v53 = vadd.f32 %v272_v51, %v150_v52  ;;  %v342_v54 = vpop.f32.mrb[1].mxu0 }
 0x12f   :  { %v154_v55 = vmul.f32 0.5, %v151_v53 }
 0x131   :  { %435 = vtanh.f32 %v154_v55 }
 0x13b   :  { %v436_v56 = vpop.eup %435 }
 0x13c   :  { %v156_v57 = vadd.f32 1.0, %v436_v56 }
 0x13e   :  { %v157_v58 = vmul.f32 0.5, %v156_v57 }
 0x140   :  { %376 = vmatmul.mubr.f32.vlgmr.msra.gmra.mrb[0].mxu1 %v157_v58 }
 0x213   :  { %v247_v60 = vpop.f32.mrb[0].mxu1 }
 0x214   :  { %v248_v61 = vadd.f32 %v273_v59, %v247_v60  ;;  %v377_v62 = vpop.f32.mrb[1].mxu1 }
 0x216   :  { %v251_v63 = vmul.f32 0.5, %v248_v61 }
 0x218   :  { %437 = vtanh.f32 %v251_v63 }
 0x222   :  { %v438_v0 = vpop.eup %437 }
 0x223   :  { %v253_v1 = vadd.f32 1.0, %v438_v0 }
 0x225   :  { %v254_v2 = vmul.f32 0.5, %v253_v1 }
 0x227   :  { %255 = vst [vmem:[#allocation8] sm:$0xff] %v254_v2 }
 0x228   :  { %516 = shalt.err (!%p513_p0)
}
 0x229   :  { %s517_s10 = scalar_lea.hbm %s653_s5, 128 }
 0x22a   :  { %p518_p1 = scmp.ne.s32.totalorder %s653_s5, %s517_s10  ;;  %p521_p2 = scmp.lt.u32.totalorder %s517_s10, %s653_s5 }
 0x22c   :  { %p523_p3 = pnand %p521_p2, %p518_p1 }
 0x22e   :  { %526 = shalt.err (!%p523_p3)
}
 0x22f   :  { %265 = dma.vmem_to_hbm [thread:$0]  %s263_s7, 128, %s653_s5, [#allocation4]  }
 0x230   :  { %531 = dma.done.wait [#allocation4], 128  }
 0x231   :  { %532 = vsyncadd [#allocation4], 4294967168 }
 0x232   :  { %269 = vsyncpa [#allocation3], 1 }
 0x233   :  { %270 = vsyncpa [#allocation6], 1 }
 0x234   :  { %271 = vsyncpa [#allocation4], 1 }

</bundles_post_ra>
